<compile_context>
chip_gen: v7x
topology: tpu7x:2x2x1
jax: 0.10.0
libtpu: 0.0.40
codegen_flags: <defaults>
</compile_context>

<pallas_src>
import jax
import jax.numpy as jnp
from jax.experimental import pallas as pl
from jax.experimental.pallas import tpu as pltpu


def _round_up(x, m):
    return ((x + m - 1) // m) * m


def ptuning_kernel(hid_ref, pbias_ref, ffn_wh_ref, out_ref):
    # hid_ref   : (rt, H) f32   encoder output hidden states (row tile)
    # pbias_ref : (rt, L) f32   gathered prefix contribution + ffn bias
    # ffn_wh_ref: (H,  L) bf16  ffn weight rows acting on hidden states
    # out_ref   : (rt, L) f32   log_softmax logits
    hidden_part = jnp.dot(hid_ref[...].astype(jnp.bfloat16), ffn_wh_ref[...],
                          preferred_element_type=jnp.float32)          # (rt, L)
    logits = hidden_part + pbias_ref[...]

    # dropout (eval) = identity; log_softmax over last dim (row-wise only)
    m = jnp.max(logits, axis=-1, keepdims=True)
    z = logits - m
    lse = jnp.log(jnp.sum(jnp.exp(z), axis=-1, keepdims=True))
    out_ref[...] = z - lse


def ptuning_forward(prefix_ids, hidden_states, emb_w, pre_w, pre_b, ffn_w, ffn_b):
    """prefix_ids: (B, S) int32; hidden_states: (B, S, H) f32.

    Implements the non-pretraining branch of PTuning.forward:
      log_softmax(ffn(concat([relu(pre_mlp(embedder(prefix))), hidden], -1)))
    """
    B, S, H = hidden_states.shape
    NH, HD = emb_w.shape
    L = ffn_b.shape[-1]
    BS = B * S

    # --- weight-only constant folding of the prefix chain (exact, f32) ------
    # ffn(concat([p, h])) == p @ W[:HD] + h @ W[HD:] + b, and the embedding
    # row-select commutes with the affine+ReLU chain, so fold the prefix side
    # into an (NH, L) table, then gather per row and fold in the bias.
    ffn_wp = ffn_w[:HD]                                     # (HD, L)
    ffn_wh = ffn_w[HD:]                                     # (H,  L)
    table = jnp.maximum(emb_w @ pre_w + pre_b.reshape(1, HD), 0.0) @ ffn_wp
    table = table.astype(jnp.float32)                       # (NH, L)

    ids_flat = prefix_ids.reshape(BS).astype(jnp.int32)
    # tiny (BS, L) per-row bias; replaces the one-hot input + f32 MXU matmul
    pbias = (jnp.take(table, ids_flat, axis=0)
             + ffn_b.reshape(1, L)).astype(jnp.float32)      # (BS, L)

    hid = hidden_states.reshape(BS, H)                       # f32, no copy/cast/pad
    ffn_wh_bf = ffn_wh.astype(jnp.bfloat16)                  # (H, L) resident weight

    # --- row tiling: multiple of 16 sublanes (bf16 packing), <= 1024 rows ----
    row_tile = min(1024, _round_up(BS, 16))
    # guarantee >= 2 grid steps once there is non-trivial work (v7x megacore)
    if BS >= 32 and pl.cdiv(BS, row_tile) < 2:
        row_tile = _round_up(pl.cdiv(BS, 2), 16)
    num_tiles = pl.cdiv(BS, row_tile)

    cost = pl.CostEstimate(
        flops=2 * BS * H * L + 6 * BS * L,
        transcendentals=BS * (L + 1),
        bytes_accessed=(BS * H * 4          # hidden read (f32)
                        + BS * L * 4        # prefix bias read
                        + H * L * 2         # ffn weight (bf16)
                        + BS * L * 4),      # output write
    )

    # explicit scoped-VMEM budget (double-buffered blocks + resident weight)
    block_bytes = row_tile * (H * 4 + L * 4 + L * 4)
    vmem_need = 2 * block_bytes + H * L * 2 + (1 << 20)
    vmem_limit = min(max(vmem_need, 16 << 20), 48 << 20)    # inside v7x's 64 MiB

    grid_spec = pltpu.PrefetchScalarGridSpec(
        num_scalar_prefetch=0,
        grid=(num_tiles,),
        in_specs=[
            pl.BlockSpec((row_tile, H), lambda r: (r, 0)),   # hidden states (f32)
            pl.BlockSpec((row_tile, L), lambda r: (r, 0)),   # prefix bias
            pl.BlockSpec((H, L), lambda r: (0, 0)),          # ffn W (hidden rows)
        ],
        out_specs=pl.BlockSpec((row_tile, L), lambda r: (r, 0)),
    )

    out = pl.pallas_call(
        ptuning_kernel,
        out_shape=jax.ShapeDtypeStruct((BS, L), jnp.float32),
        grid_spec=grid_spec,
        compiler_params=pltpu.CompilerParams(
            dimension_semantics=("parallel",),
            vmem_limit_bytes=vmem_limit),
        cost_estimate=cost,
    )(hid, pbias, ffn_wh_bf)

    return out.reshape(B, S, L)


if __name__ == "__main__":
    # TODO(synk): the pretrained BERT encoder (self.model) is not reproduced;
    # its output hidden states are generated synthetically below.
    B, S = 2, 8                 # batch, sequence length
    H = 32                      # config.hidden_size
    NH = 4                      # config.num_attention_heads
    HD = H // NH                # head dim = hidden_size / num_attention_heads
    L = 4                       # num_labels

    key = jax.random.PRNGKey(0)
    k_hid, k_emb, k_pw, k_pb, k_fw, k_fb, k_ids = jax.random.split(key, 7)

    hidden_states = jax.random.normal(k_hid, (B, S, H), dtype=jnp.float32)
    prefix_ids = jax.random.randint(k_ids, (B, S), 0, NH, dtype=jnp.int32)

    # deterministic synthetic parameters (PyTorch shapes, stored as (in, out))
    emb_w = jax.random.normal(k_emb, (NH, HD), dtype=jnp.float32) * 0.1   # nn.Embedding
    pre_w = jax.random.normal(k_pw, (HD, HD), dtype=jnp.float32) * 0.1    # pre_mlp
    pre_b = jax.random.normal(k_pb, (HD,), dtype=jnp.float32) * 0.1
    ffn_w = jax.random.normal(k_fw, (H + HD, L), dtype=jnp.float32) * 0.1  # ffn
    ffn_b = jax.random.normal(k_fb, (L,), dtype=jnp.float32) * 0.1

    out = ptuning_forward(prefix_ids, hidden_states,
                          emb_w, pre_w, pre_b, ffn_w, ffn_b)
    out = jax.block_until_ready(out)

    # pure-JAX f32 reference (hidden-side matmul in the kernel runs in bf16,
    # so tolerance is loosened accordingly)
    emb = emb_w[prefix_ids]                                  # (B, S, HD)
    pre = jnp.maximum(emb @ pre_w + pre_b, 0.0)
    cat = jnp.concatenate([pre, hidden_states], axis=-1)
    ref = jax.nn.log_softmax(cat @ ffn_w + ffn_b, axis=-1)
    assert out.shape == (B, S, L)
    assert jnp.allclose(out, ref, atol=2e-2), "mismatch vs reference"

    print("KERNEL_OK")
</pallas_src>

<mosaic_0001>
module attributes {stable_mosaic.version = 11 : i64} {
  func.func @ptuning_kernel(%arg0: i32, %arg1: memref<16x32xf32, #tpu.memory_space<vmem>>, %arg2: memref<16x4xf32, #tpu.memory_space<vmem>>, %arg3: memref<32x4xbf16, #tpu.memory_space<vmem>>, %arg4: memref<16x4xf32, #tpu.memory_space<vmem>>) attributes {dimension_semantics = [#tpu.dimension_semantics<parallel>], iteration_bounds = array<i64: 1>, scalar_prefetch = 0 : i64, scratch_operands = 0 : i64, tpu.core_type = #tpu.core_type<tc>, window_params = [{transform_indices = @transform_0, window_bounds = array<i64: 16, 32>}, {transform_indices = @transform_1, window_bounds = array<i64: 16, 4>}, {pipeline_mode = #tpu.pipeline_mode<synchronous>, transform_indices = @transform_2, window_bounds = array<i64: 32, 4>}, {transform_indices = @transform_3, window_bounds = array<i64: 16, 4>}]} {
    %c0 = arith.constant 0 : index
    %c0_0 = arith.constant 0 : index
    %0 = vector.load %arg1[%c0, %c0_0] : memref<16x32xf32, #tpu.memory_space<vmem>>, vector<16x32xf32>
    %1 = arith.truncf %0 : vector<16x32xf32> to vector<16x32xbf16>
    %c0_1 = arith.constant 0 : index
    %c0_2 = arith.constant 0 : index
    %2 = vector.load %arg3[%c0_1, %c0_2] : memref<32x4xbf16, #tpu.memory_space<vmem>>, vector<32x4xbf16>
    %cst = arith.constant dense<0.000000e+00> : vector<16x4xf32>
    %3 = tpu.matmul %1, %2, %cst {dimension_numbers = #tpu.dot_dimension_numbers<[1], [0], [0], [1], [0, 0, 1, 1], [], []>} : vector<16x32xbf16>, vector<32x4xbf16>, vector<16x4xf32> -> vector<16x4xf32>
    %c0_3 = arith.constant 0 : index
    %c0_4 = arith.constant 0 : index
    %4 = vector.load %arg2[%c0_3, %c0_4] : memref<16x4xf32, #tpu.memory_space<vmem>>, vector<16x4xf32>
    %5 = arith.addf %3, %4 : vector<16x4xf32>
    %cst_5 = arith.constant dense<0xFF800000> : vector<16xf32>
    %6 = vector.multi_reduction <maximumf>, %5, %cst_5 [1] : vector<16x4xf32> to vector<16xf32>
    %7 = vector.shape_cast %6 : vector<16xf32> to vector<16x1xf32>
    %8 = vector.broadcast %7 : vector<16x1xf32> to vector<16x4xf32>
    %9 = arith.subf %5, %8 : vector<16x4xf32>
    %10 = math.exp %9 : vector<16x4xf32>
    %cst_6 = arith.constant dense<0.000000e+00> : vector<16xf32>
    %11 = vector.multi_reduction <add>, %10, %cst_6 [1] : vector<16x4xf32> to vector<16xf32>
    %12 = vector.shape_cast %11 : vector<16xf32> to vector<16x1xf32>
    %13 = math.log %12 : vector<16x1xf32>
    %14 = vector.broadcast %13 : vector<16x1xf32> to vector<16x4xf32>
    %15 = arith.subf %9, %14 : vector<16x4xf32>
    %c0_7 = arith.constant 0 : index
    %c0_8 = arith.constant 0 : index
    %16 = vector.load %arg4[%c0_7, %c0_8] : memref<16x4xf32, #tpu.memory_space<vmem>>, vector<16x4xf32>
    tpu.vector_store %arg4[%c0_7, %c0_8], %15 {strides = array<i32>} : memref<16x4xf32, #tpu.memory_space<vmem>>, vector<16x4xf32>,
    return
  }
  func.func @transform_0(%arg0: i32) -> (i32, i32) {
    %c0_i32 = arith.constant 0 : i32
    %c0_i32_0 = arith.constant 0 : i32
    return %arg0, %c0_i32 : i32, i32
  }
  func.func @transform_1(%arg0: i32) -> (i32, i32) {
    %c0_i32 = arith.constant 0 : i32
    %c0_i32_0 = arith.constant 0 : i32
    return %arg0, %c0_i32 : i32, i32
  }
  func.func @transform_2(%arg0: i32) -> (i32, i32) {
    %c0_i32 = arith.constant 0 : i32
    %c0_i32_0 = arith.constant 0 : i32
    %c0_i32_1 = arith.constant 0 : i32
    return %c0_i32, %c0_i32_0 : i32, i32
  }
  func.func @transform_3(%arg0: i32) -> (i32, i32) {
    %c0_i32 = arith.constant 0 : i32
    %c0_i32_0 = arith.constant 0 : i32
    return %arg0, %c0_i32 : i32, i32
  }
}

</mosaic_0001>

<bundles_post_ra>
// kernel: tpu_custom_call.1
= control target key start
LH: loop header
LB: loop body
LE: loop exit
PB: predicated region body
PF: predicated region fallthrough
CT: control target
= control target key end

     0   :  { %v138_v0 = vmov 0.0   ;;  %vm139_vm0 = vmmov 0   ;;  %vm36_vm1 = vcmask 261120   ;;  %vm81_vm2 = vcmask 31744   ;;  %s190_s2 = inlined_call_operand.vmem [shape: bf16[32,4], index: 2, kind: input, shape index: {}]   ;;  %s191_s0 = inlined_call_operand.vmem [shape: f32[16,32], index: 0, kind: input, shape index: {}]   ;;  %s192_s1 = inlined_call_operand.vmem [shape: f32[16,4], index: 1, kind: input, shape index: {}]   ;;  %s193_s3 = inlined_call_operand.vmem [shape: f32[16,4], index: 3, kind: output, shape index: {}]  }
   0x1   :  { %118 = vmatprep.subr.bf16.mxu0 %v138_v0  ;;  %v128_v1 = vld [vmem:[%s190_s2] sm:$0xff]   ;;  %122 = vmatprep.mubr.msk.bf16.mxu0 %vm139_vm0, %v138_v0  ;;  %v129_v2 = vld [vmem:[%s190_s2 + $0x8] sm:$0xff]  }
   0x2   :  { %119 = vmatpush3.bf16.msra.mxu0 %v128_v1  ;;  %v15_v3 = vld [vmem:[%s191_s0] sm:$0xff]  ;;  %v16_v4 = vld [vmem:[%s191_s0 + $0x8] sm:$0xff] }
   0x3   :  { %120 = vmatprep.subr.bf16.mxu0 %v138_v0  ;;  %v17_v5 = vpack.c.bf16 %v16_v4, %v15_v3  ;;  %v22_v6 = vld [vmem:[%s192_s1] sm:$0xff]  ;;  %v23_v8 = vld [vmem:[%s192_s1 + $0x8] sm:$0xff] }
   0x6   :  { %121 = vmatpush3.bf16.msra.mxu0 %v129_v2 }
   0x9   :  { %123 = vmatmul.mubr.msk.bf16.vlgmr.msra.gmra.mrb[0].mxu0 %vm36_vm1, %v17_v5 }
  0xdc   :  { %v74_v7 = vpop.f32.mrb[0].mxu0 }
  0xdd   :  { %v75_v9 = vadd.f32 %v74_v7, %v22_v6  ;;  %v124_v10 = vpop.f32.mrb[1].mxu0 }
  0xde   :  { %v77_v11 = vpop.f32.mrb[2].mxu0 }
  0xdf   :  { %v78_v12 = vadd.f32 %v77_v11, %v23_v8  ;;  %v125_v13 = vpop.f32.mrb[3].mxu0  ;;  %v82_v14 = vsel %vm81_vm2, %v75_v9, -inf }
  0xe0   :  { %83 = vmax.xlane.f32.xlu0 %v82_v14 }
  0xe1   :  { %v85_v15 = vsel %vm81_vm2, %v78_v12, -inf }
  0xe4   :  { %86 = vmax.xlane.f32.xlu0 %v85_v15 }
 0x16d   :  { %v84_v16 = vpop.xlane.xlu0 %83 }
 0x16e   :  { %v88_v17 = vsub.f32 %v75_v9, %v84_v16 }
 0x170   :  { %v90_v18 = vmul.f32 1.442695, %v88_v17 }
 0x171   :  { %v87_v19 = vpop.xlane.xlu0 %86 }
 0x172   :  { %130 = vpow2.f32 %v90_v18  ;;  %v89_v20 = vsub.f32 %v78_v12, %v87_v19 }
 0x174   :  { %v92_v21 = vmul.f32 1.442695, %v89_v20 }
 0x176   :  { %132 = vpow2.f32 %v92_v21 }
 0x17c   :  { %v131_v22 = vpop.eup %130 }
 0x17d   :  { %v94_v23 = vsel %vm81_vm2, %v131_v22, 0.0 }
 0x17e   :  { %95 = vadd.xlane.f32.xlu1 %v94_v23 }
 0x180   :  { %v133_v24 = vpop.eup %132 }
 0x181   :  { %v97_v25 = vsel %vm81_vm2, %v133_v24, 0.0 }
 0x182   :  { %98 = vadd.xlane.f32.xlu1 %v97_v25 }
 0x20b   :  { %v96_v26 = vpop.xlane.xlu1 %95 }
 0x20c   :  { %134 = vlog2.f32 %v96_v26 }
 0x20f   :  { %v99_v27 = vpop.xlane.xlu1 %98 }
 0x210   :  { %136 = vlog2.f32 %v99_v27 }
 0x216   :  { %v135_v28 = vpop.eup %134 }
 0x217   :  { %v101_v29 = vmul.f32 0.6931472, %v135_v28 }
 0x219   :  { %v104_v30 = vsub.f32 %v88_v17, %v101_v29 }
 0x21a   :  { %v137_v31 = vpop.eup %136 }
 0x21b   :  { %106 = vst.msk [vmem:[%s193_s3] sm:$0xff] %vm81_vm2, %v104_v30  ;;  %v103_v32 = vmul.f32 0.6931472, %v137_v31 }
 0x21d   :  { %v105_v33 = vsub.f32 %v89_v20, %v103_v32 }
 0x21f   :  { %107 = vst.msk [vmem:[%s193_s3 + $0x8] sm:$0xff] %vm81_vm2, %v105_v33 }

</bundles_post_ra>
